<compile_context>
chip_gen: v7x
topology: tpu7x:2x2x1
jax: 0.10.0
libtpu: 0.0.40
codegen_flags: <defaults>
</compile_context>

<pallas_src>
import functools

import jax
import jax.numpy as jnp
from jax.experimental import pallas as pl
from jax.experimental.pallas import tpu as pltpu


def _attention_graph_kernel(x_ref, wq_t_ref, bq_ref, wk_ref, mask_ref, bk_bd_ref,
                            out_ref, *, B: int, H: int, D: int, N: int,
                            positive: bool):
    # x_ref    : (B, S, N)        raw input, native layout (no wrapper transpose)
    # wq_t_ref : (S, H*D)         q weight, pre-transposed, lane-dense (last dim 128)
    # bq_ref   : (1, H*D)         q bias
    # wk_ref   : (H*D, S)         k weight, PyTorch layout (used as direct-kT projection)
    # mask_ref : (H*D, H*N)       precomputed 0/1 block-diagonal head mask
    # bk_bd_ref: (H*D, H*N)       precomputed block-diagonal (masked) k bias
    # out_ref  : (B, H, N, N)
    HD = H * D

    wq_t = wq_t_ref[...]                 # (S, HD)
    wk = wk_ref[...]                     # (HD, S)
    bd_mask = mask_ref[...]              # (HD, H*N)
    bk_bd = bk_bd_ref[...]               # (HD, H*N)
    # Hoisted once (JAX does not CSE broadcast_in_dim across the unrolled b loop).
    bq_full = jnp.broadcast_to(bq_ref[...], (N, HD))   # (N, HD)

    for b in range(B):                   # B=2: static unroll
        x_b = x_ref[b]                   # (S, N)
        # Tiny in-kernel transpose (S,N)->(N,S): XLU slot, essentially free.
        x_bt = x_b.T                     # (N, S)

        # q for ALL heads in one lane-dense MXU contraction: (N,S)@(S,HD).
        q_all = jnp.dot(x_bt, wq_t,
                        preferred_element_type=jnp.float32) + bq_full   # (N, HD)

        # Direct k^T, replicated across head column-groups.  The lane-concat is
        # done on x_b (a single vreg) BEFORE the matmul, so the replication is
        # ~1 vreg of XLU work and the MXU produces the tiled product directly.
        x_tiled = jnp.concatenate([x_b] * H, axis=1)                     # (S, H*N)
        kt_tiled = jnp.dot(wk, x_tiled,
                           preferred_element_type=jnp.float32)           # (HD, H*N)
        # Mask to block-diagonal (head h rows <-> head h columns) and add the
        # pre-masked bias: kT_bd[:, h*N:(h+1)*N] rows h*D:(h+1)*D == k_h^T.
        kt_bd = kt_tiled * bd_mask + bk_bd                               # (HD, H*N)

        # All H attention maps in ONE MXU op (K=128): lane-dense (N, H*N) slab,
        # where columns [h*N:(h+1)*N] == q_h @ k_h^T.
        a_all = jnp.dot(q_all, kt_bd,
                        preferred_element_type=jnp.float32)              # (N, H*N)
        if not positive:
            a_all = 1.0 - a_all

        # Split the slab back into the module's (B,H,N,N) layout.  Kept on
        # purpose: a lane-dense out_shape would require a post-kernel
        # reshape+transpose (extra XLA dispatch) to restore module semantics.
        for h in range(H):               # H=4: static unroll
            out_ref[b, h, :, :] = a_all[:, h * N:(h + 1) * N].astype(out_ref.dtype)


def prepare_attention_graph_params(wq, bq, wk, bk, *, heads, fc_dim, num_nodes):
    """One-time (init-time) parameter preparation.  Do NOT call per forward.

    wq/wk: (H*D, S) PyTorch Linear layout; bq/bk: (H*D,)."""
    H, D, N = heads, fc_dim, num_nodes
    HD = H * D
    S = wq.shape[1]
    assert wq.shape == (HD, S) and wk.shape == (HD, S)
    assert bq.shape == (HD,) and bk.shape == (HD,)

    wq_t = jnp.asarray(wq, jnp.float32).T                    # (S, HD) lane-dense
    bq_row = jnp.asarray(bq, jnp.float32).reshape(1, HD)     # (1, HD)
    wk_f = jnp.asarray(wk, jnp.float32)                      # (HD, S)

    # Block-diagonal head mask: mask[i, j] = 1  iff  (i // D) == (j // N).
    row_head = (jnp.arange(HD) // D)[:, None]                # (HD, 1)
    col_head = (jnp.arange(H * N) // N)[None, :]             # (1, H*N)
    bd_mask = (row_head == col_head).astype(jnp.float32)     # (HD, H*N)
    # k bias, already broadcast along lanes and masked to the diagonal blocks.
    bk_bd = bd_mask * jnp.asarray(bk, jnp.float32)[:, None]  # (HD, H*N)

    return (wq_t, bq_row, wk_f, bd_mask, bk_bd)


def attention_graph_pallas(x, params, *, heads, fc_dim, model_type="positive"):
    """x: (B, S, N) f32.  params: output of prepare_attention_graph_params."""
    B, S, N = x.shape
    H, D = heads, fc_dim
    wq_t, bq_row, wk, bd_mask, bk_bd = params

    kernel = functools.partial(_attention_graph_kernel, B=B, H=H, D=D, N=N,
                               positive=(model_type == "positive"))

    # Single gridless invocation: whole problem (<100 KiB) lives in VMEM on every
    # TPU generation, so we pay the pallas_call fixed cost exactly once.
    return pl.pallas_call(
        kernel,
        out_shape=jax.ShapeDtypeStruct((B, H, N, N), jnp.float32),
        in_specs=[pl.BlockSpec(memory_space=pltpu.MemorySpace.VMEM)
                  for _ in range(6)],
        out_specs=pl.BlockSpec(memory_space=pltpu.MemorySpace.VMEM),
    )(x, wq_t, bq_row, wk, bd_mask, bk_bd)


def _reference(x, wq, bq, wk, bk, heads, fc_dim, model_type):
    # Pure-JAX reference mirroring the PyTorch forward.
    x_t = jnp.transpose(x, (0, 2, 1))                     # (B, N, S)
    B, N, S = x_t.shape
    q = x_t @ wq.T + bq                                   # (B, N, H*D)
    k = x_t @ wk.T + bk
    q = q.reshape(B, N, heads, fc_dim).transpose(0, 2, 1, 3)
    k = k.reshape(B, N, heads, fc_dim).transpose(0, 2, 1, 3)
    a = jnp.einsum("bhnd,bhmd->bhnm", q, k)
    return a if model_type == "positive" else 1.0 - a


if __name__ == "__main__":
    # configs: seq_len=8, fc_dim_graph=32, num_corr_adj=4 (heads), N=16 nodes, B=2
    B, S, N = 2, 8, 16
    H, D = 4, 32
    model_type = "positive"

    key = jax.random.PRNGKey(0)
    kx, kwq, kbq, kwk, kbk = jax.random.split(key, 5)

    x = jax.random.normal(kx, (B, S, N), dtype=jnp.float32)
    # PyTorch Linear convention: weight (out_features, in_features), bias (out_features,)
    wq = jax.random.normal(kwq, (H * D, S), dtype=jnp.float32) * 0.1
    bq = jax.random.normal(kbq, (H * D,), dtype=jnp.float32) * 0.1
    wk = jax.random.normal(kwk, (H * D, S), dtype=jnp.float32) * 0.1
    bk = jax.random.normal(kbk, (H * D,), dtype=jnp.float32) * 0.1

    # One-time parameter prep (init-time) -- not in the per-call jitted path.
    params = prepare_attention_graph_params(wq, bq, wk, bk,
                                            heads=H, fc_dim=D, num_nodes=N)
    params = tuple(jax.block_until_ready(p) for p in params)

    fwd = jax.jit(functools.partial(attention_graph_pallas,
                                    heads=H, fc_dim=D, model_type=model_type))
    out = jax.block_until_ready(fwd(x, params))

    ref = _reference(x, wq, bq, wk, bk, H, D, model_type)
    assert out.shape == (B, H, N, N)
    assert jnp.allclose(out, ref, atol=1e-4, rtol=1e-4)

    print("KERNEL_OK")
</pallas_src>

<mosaic_0001>
module attributes {stable_mosaic.version = 11 : i64} {
  func.func @_attention_graph_kernel(%arg0: memref<2x8x16xf32, #tpu.memory_space<vmem>>, %arg1: memref<8x128xf32, #tpu.memory_space<vmem>>, %arg2: memref<1x128xf32, #tpu.memory_space<vmem>>, %arg3: memref<128x8xf32, #tpu.memory_space<vmem>>, %arg4: memref<128x64xf32, #tpu.memory_space<vmem>>, %arg5: memref<128x64xf32, #tpu.memory_space<vmem>>, %arg6: memref<2x4x16x16xf32, #tpu.memory_space<vmem>>) attributes {dimension_semantics = [], scalar_prefetch = 0 : i64, scratch_operands = 0 : i64, tpu.core_type = #tpu.core_type<tc>} {
    %c0 = arith.constant 0 : index
    %c0_0 = arith.constant 0 : index
    %0 = vector.load %arg1[%c0, %c0_0] : memref<8x128xf32, #tpu.memory_space<vmem>>, vector<8x128xf32>
    %c0_1 = arith.constant 0 : index
    %c0_2 = arith.constant 0 : index
    %1 = vector.load %arg3[%c0_1, %c0_2] : memref<128x8xf32, #tpu.memory_space<vmem>>, vector<128x8xf32>
    %c0_3 = arith.constant 0 : index
    %c0_4 = arith.constant 0 : index
    %2 = vector.load %arg4[%c0_3, %c0_4] : memref<128x64xf32, #tpu.memory_space<vmem>>, vector<128x64xf32>
    %c0_5 = arith.constant 0 : index
    %c0_6 = arith.constant 0 : index
    %3 = vector.load %arg5[%c0_5, %c0_6] : memref<128x64xf32, #tpu.memory_space<vmem>>, vector<128x64xf32>
    %c0_7 = arith.constant 0 : index
    %c0_8 = arith.constant 0 : index
    %4 = vector.load %arg2[%c0_7, %c0_8] : memref<1x128xf32, #tpu.memory_space<vmem>>, vector<1x128xf32>
    %5 = vector.shape_cast %4 : vector<1x128xf32> to vector<1x128xf32>
    %6 = vector.broadcast %5 : vector<1x128xf32> to vector<16x128xf32>
    %c0_9 = arith.constant 0 : index
    %c0_10 = arith.constant 0 : index
    %c0_11 = arith.constant 0 : index
    %7 = vector.load %arg0[%c0_9, %c0_10, %c0_11] : memref<2x8x16xf32, #tpu.memory_space<vmem>>, vector<1x8x16xf32>
    %8 = vector.shape_cast %7 : vector<1x8x16xf32> to vector<8x16xf32>
    %9 = tpu.transpose %8, [1, 0] : vector<8x16xf32> -> vector<16x8xf32>
    %cst = arith.constant dense<0.000000e+00> : vector<16x128xf32>
    %10 = tpu.matmul %9, %0, %cst {dimension_numbers = #tpu.dot_dimension_numbers<[1], [0], [0], [1], [0, 0, 1, 1], [], []>} : vector<16x8xf32>, vector<8x128xf32>, vector<16x128xf32> -> vector<16x128xf32>
    %11 = arith.addf %10, %6 : vector<16x128xf32>
    %12 = tpu.concatenate %8, %8, %8, %8 in 1 : vector<8x16xf32>, vector<8x16xf32>, vector<8x16xf32>, vector<8x16xf32> -> vector<8x64xf32>
    %cst_12 = arith.constant dense<0.000000e+00> : vector<128x64xf32>
    %13 = tpu.matmul %1, %12, %cst_12 {dimension_numbers = #tpu.dot_dimension_numbers<[1], [0], [0], [1], [0, 0, 1, 1], [], []>} : vector<128x8xf32>, vector<8x64xf32>, vector<128x64xf32> -> vector<128x64xf32>
    %14 = arith.mulf %13, %2 : vector<128x64xf32>
    %15 = arith.addf %14, %3 : vector<128x64xf32>
    %cst_13 = arith.constant dense<0.000000e+00> : vector<16x64xf32>
    %16 = tpu.matmul %11, %15, %cst_13 {dimension_numbers = #tpu.dot_dimension_numbers<[1], [0], [0], [1], [0, 0, 1, 1], [], []>} : vector<16x128xf32>, vector<128x64xf32>, vector<16x64xf32> -> vector<16x64xf32>
    %17 = vector.extract_strided_slice %16 {offsets = [0, 0], sizes = [16, 16], strides = [1, 1]} : vector<16x64xf32> to vector<16x16xf32>
    %c0_14 = arith.constant 0 : index
    %c0_15 = arith.constant 0 : index
    %c0_16 = arith.constant 0 : index
    %c0_17 = arith.constant 0 : index
    %18 = vector.load %arg6[%c0_14, %c0_15, %c0_16, %c0_17] : memref<2x4x16x16xf32, #tpu.memory_space<vmem>>, vector<1x1x16x16xf32>
    %19 = vector.shape_cast %18 : vector<1x1x16x16xf32> to vector<16x16xf32>
    %20 = vector.shape_cast %17 : vector<16x16xf32> to vector<1x1x16x16xf32>
    tpu.vector_store %arg6[%c0_14, %c0_15, %c0_16, %c0_17], %20 {strides = array<i32>} : memref<2x4x16x16xf32, #tpu.memory_space<vmem>>, vector<1x1x16x16xf32>,
    %21 = vector.extract_strided_slice %16 {offsets = [0, 16], sizes = [16, 16], strides = [1, 1]} : vector<16x64xf32> to vector<16x16xf32>
    %c0_18 = arith.constant 0 : index
    %c1 = arith.constant 1 : index
    %c0_19 = arith.constant 0 : index
    %c0_20 = arith.constant 0 : index
    %22 = vector.load %arg6[%c0_18, %c1, %c0_19, %c0_20] : memref<2x4x16x16xf32, #tpu.memory_space<vmem>>, vector<1x1x16x16xf32>
    %23 = vector.shape_cast %22 : vector<1x1x16x16xf32> to vector<16x16xf32>
    %24 = vector.shape_cast %21 : vector<16x16xf32> to vector<1x1x16x16xf32>
    tpu.vector_store %arg6[%c0_18, %c1, %c0_19, %c0_20], %24 {strides = array<i32>} : memref<2x4x16x16xf32, #tpu.memory_space<vmem>>, vector<1x1x16x16xf32>,
    %25 = vector.extract_strided_slice %16 {offsets = [0, 32], sizes = [16, 16], strides = [1, 1]} : vector<16x64xf32> to vector<16x16xf32>
    %c0_21 = arith.constant 0 : index
    %c2 = arith.constant 2 : index
    %c0_22 = arith.constant 0 : index
    %c0_23 = arith.constant 0 : index
    %26 = vector.load %arg6[%c0_21, %c2, %c0_22, %c0_23] : memref<2x4x16x16xf32, #tpu.memory_space<vmem>>, vector<1x1x16x16xf32>
    %27 = vector.shape_cast %26 : vector<1x1x16x16xf32> to vector<16x16xf32>
    %28 = vector.shape_cast %25 : vector<16x16xf32> to vector<1x1x16x16xf32>
    tpu.vector_store %arg6[%c0_21, %c2, %c0_22, %c0_23], %28 {strides = array<i32>} : memref<2x4x16x16xf32, #tpu.memory_space<vmem>>, vector<1x1x16x16xf32>,
    %29 = vector.extract_strided_slice %16 {offsets = [0, 48], sizes = [16, 16], strides = [1, 1]} : vector<16x64xf32> to vector<16x16xf32>
    %c0_24 = arith.constant 0 : index
    %c3 = arith.constant 3 : index
    %c0_25 = arith.constant 0 : index
    %c0_26 = arith.constant 0 : index
    %30 = vector.load %arg6[%c0_24, %c3, %c0_25, %c0_26] : memref<2x4x16x16xf32, #tpu.memory_space<vmem>>, vector<1x1x16x16xf32>
    %31 = vector.shape_cast %30 : vector<1x1x16x16xf32> to vector<16x16xf32>
    %32 = vector.shape_cast %29 : vector<16x16xf32> to vector<1x1x16x16xf32>
    tpu.vector_store %arg6[%c0_24, %c3, %c0_25, %c0_26], %32 {strides = array<i32>} : memref<2x4x16x16xf32, #tpu.memory_space<vmem>>, vector<1x1x16x16xf32>,
    %c1_27 = arith.constant 1 : index
    %c0_28 = arith.constant 0 : index
    %c0_29 = arith.constant 0 : index
    %33 = vector.load %arg0[%c1_27, %c0_28, %c0_29] : memref<2x8x16xf32, #tpu.memory_space<vmem>>, vector<1x8x16xf32>
    %34 = vector.shape_cast %33 : vector<1x8x16xf32> to vector<8x16xf32>
    %35 = tpu.transpose %34, [1, 0] : vector<8x16xf32> -> vector<16x8xf32>
    %cst_30 = arith.constant dense<0.000000e+00> : vector<16x128xf32>
    %36 = tpu.matmul %35, %0, %cst_30 {dimension_numbers = #tpu.dot_dimension_numbers<[1], [0], [0], [1], [0, 0, 1, 1], [], []>} : vector<16x8xf32>, vector<8x128xf32>, vector<16x128xf32> -> vector<16x128xf32>
    %37 = arith.addf %36, %6 : vector<16x128xf32>
    %38 = tpu.concatenate %34, %34, %34, %34 in 1 : vector<8x16xf32>, vector<8x16xf32>, vector<8x16xf32>, vector<8x16xf32> -> vector<8x64xf32>
    %cst_31 = arith.constant dense<0.000000e+00> : vector<128x64xf32>
    %39 = tpu.matmul %1, %38, %cst_31 {dimension_numbers = #tpu.dot_dimension_numbers<[1], [0], [0], [1], [0, 0, 1, 1], [], []>} : vector<128x8xf32>, vector<8x64xf32>, vector<128x64xf32> -> vector<128x64xf32>
    %40 = arith.mulf %39, %2 : vector<128x64xf32>
    %41 = arith.addf %40, %3 : vector<128x64xf32>
    %cst_32 = arith.constant dense<0.000000e+00> : vector<16x64xf32>
    %42 = tpu.matmul %37, %41, %cst_32 {dimension_numbers = #tpu.dot_dimension_numbers<[1], [0], [0], [1], [0, 0, 1, 1], [], []>} : vector<16x128xf32>, vector<128x64xf32>, vector<16x64xf32> -> vector<16x64xf32>
    %43 = vector.extract_strided_slice %42 {offsets = [0, 0], sizes = [16, 16], strides = [1, 1]} : vector<16x64xf32> to vector<16x16xf32>
    %c1_33 = arith.constant 1 : index
    %c0_34 = arith.constant 0 : index
    %c0_35 = arith.constant 0 : index
    %c0_36 = arith.constant 0 : index
    %44 = vector.load %arg6[%c1_33, %c0_34, %c0_35, %c0_36] : memref<2x4x16x16xf32, #tpu.memory_space<vmem>>, vector<1x1x16x16xf32>
    %45 = vector.shape_cast %44 : vector<1x1x16x16xf32> to vector<16x16xf32>
    %46 = vector.shape_cast %43 : vector<16x16xf32> to vector<1x1x16x16xf32>
    tpu.vector_store %arg6[%c1_33, %c0_34, %c0_35, %c0_36], %46 {strides = array<i32>} : memref<2x4x16x16xf32, #tpu.memory_space<vmem>>, vector<1x1x16x16xf32>,
    %47 = vector.extract_strided_slice %42 {offsets = [0, 16], sizes = [16, 16], strides = [1, 1]} : vector<16x64xf32> to vector<16x16xf32>
    %c1_37 = arith.constant 1 : index
    %c1_38 = arith.constant 1 : index
    %c0_39 = arith.constant 0 : index
    %c0_40 = arith.constant 0 : index
    %48 = vector.load %arg6[%c1_37, %c1_38, %c0_39, %c0_40] : memref<2x4x16x16xf32, #tpu.memory_space<vmem>>, vector<1x1x16x16xf32>
    %49 = vector.shape_cast %48 : vector<1x1x16x16xf32> to vector<16x16xf32>
    %50 = vector.shape_cast %47 : vector<16x16xf32> to vector<1x1x16x16xf32>
    tpu.vector_store %arg6[%c1_37, %c1_38, %c0_39, %c0_40], %50 {strides = array<i32>} : memref<2x4x16x16xf32, #tpu.memory_space<vmem>>, vector<1x1x16x16xf32>,
    %51 = vector.extract_strided_slice %42 {offsets = [0, 32], sizes = [16, 16], strides = [1, 1]} : vector<16x64xf32> to vector<16x16xf32>
    %c1_41 = arith.constant 1 : index
    %c2_42 = arith.constant 2 : index
    %c0_43 = arith.constant 0 : index
    %c0_44 = arith.constant 0 : index
    %52 = vector.load %arg6[%c1_41, %c2_42, %c0_43, %c0_44] : memref<2x4x16x16xf32, #tpu.memory_space<vmem>>, vector<1x1x16x16xf32>
    %53 = vector.shape_cast %52 : vector<1x1x16x16xf32> to vector<16x16xf32>
    %54 = vector.shape_cast %51 : vector<16x16xf32> to vector<1x1x16x16xf32>
    tpu.vector_store %arg6[%c1_41, %c2_42, %c0_43, %c0_44], %54 {strides = array<i32>} : memref<2x4x16x16xf32, #tpu.memory_space<vmem>>, vector<1x1x16x16xf32>,
    %55 = vector.extract_strided_slice %42 {offsets = [0, 48], sizes = [16, 16], strides = [1, 1]} : vector<16x64xf32> to vector<16x16xf32>
    %c1_45 = arith.constant 1 : index
    %c3_46 = arith.constant 3 : index
    %c0_47 = arith.constant 0 : index
    %c0_48 = arith.constant 0 : index
    %56 = vector.load %arg6[%c1_45, %c3_46, %c0_47, %c0_48] : memref<2x4x16x16xf32, #tpu.memory_space<vmem>>, vector<1x1x16x16xf32>
    %57 = vector.shape_cast %56 : vector<1x1x16x16xf32> to vector<16x16xf32>
    %58 = vector.shape_cast %55 : vector<16x16xf32> to vector<1x1x16x16xf32>
    tpu.vector_store %arg6[%c1_45, %c3_46, %c0_47, %c0_48], %58 {strides = array<i32>} : memref<2x4x16x16xf32, #tpu.memory_space<vmem>>, vector<1x1x16x16xf32>,
    return
  }
}

</mosaic_0001>

<bundles_post_ra>
// kernel: attention_graph_pallas.1
= control target key start
LH: loop header
LB: loop body
LE: loop exit
PB: predicated region body
PF: predicated region fallthrough
CT: control target
= control target key end

     0   :  { %s1314_s23 = smov 48   ;;  %s1315_s24 = smov 16   ;;  %vm113_vm0 = vcmask 64512   ;;  %s1801_s0 = inlined_call_operand.vmem [shape: f32[2,8,16], index: 0, kind: input, shape index: {}]   ;;  %s1802_s1 = inlined_call_operand.vmem [shape: f32[8,128], index: 1, kind: input, shape index: {}]   ;;  %s1803_s2 = inlined_call_operand.vmem [shape: f32[1,128], index: 2, kind: input, shape index: {}]   ;;  %s1804_s3 = inlined_call_operand.vmem [shape: f32[128,8], index: 3, kind: input, shape index: {}]   ;;  %s1805_s4 = inlined_call_operand.vmem [shape: f32[128,64], index: 4, kind: input, shape index: {}]   ;;  %s1806_s5 = inlined_call_operand.vmem [shape: f32[128,64], index: 5, kind: input, shape index: {}]   ;;  %s1807_s6 = inlined_call_operand.hbm [shape: f32[2,4,16,16], index: 6, kind: output, shape index: {}]  }
   0x1   :  { %v80_v0 = vld [vmem:[%s1801_s0] sm:$0xff] }
   0x2   :  { %202 = vrot.lane.b32.xlu1 %v80_v0, %s1314_s23  ;;  %196 = vrot.lane.b32.xlu0 %v80_v0, %s1315_s24  ;;  %v1364_v1 = vld [vmem:[%s1804_s3] sm:$0xff] }
   0x3   :  { %1091 = vmatprep.mubr.msk.f32.mxu1 %vm113_vm0, %v1364_v1 }
   0x4   :  { %11 = vsyncpa [#allocation3], 0  ;;  %s1316_s27 = smov 32   ;;  %v24_v2 = vld [vmem:[%s1802_s1] sm:$0xff]  ;;  %v989_v3 = vld [vmem:[%s1801_s0 + $0x8] sm:$0xff]  ;;  %vm205_vm1 = vcmask 130048  }
   0x5   :  { %1084 = vmatprep.subr.mxu0 %v24_v2  ;;  %vm207_vm2 = vcmask 261120   ;;  %vm209_vm3 = vcmask 392192   ;;  %v1380_v10 = vld [vmem:[%s1804_s3 + $0x8] sm:$0xff]  ;;  %v1385_v11 = vld [vmem:[%s1804_s3 + $0x10] sm:$0xff]  ;;  %v1394_v12 = vld [vmem:[%s1804_s3 + $0x18] sm:$0xff]  ;;  %s1319_s20 = smov 80  }
   0x6   :  { %199 = vrot.lane.b32.xlu0 %v80_v0, %s1316_s27  ;;  %1085 = vmatpush3.msra.mxu0 %v24_v2  ;;  %v1399_v13 = vld [vmem:[%s1804_s3 + $0x20] sm:$0xff]  ;;  %v1408_v14 = vld [vmem:[%s1804_s3 + $0x28] sm:$0xff]  ;;  %v1413_v15 = vld [vmem:[%s1804_s3 + $0x30] sm:$0xff]  ;;  %s1320_s21 = smov [#allocation2]  }
   0x7   :  { %v1422_v16 = vld [vmem:[%s1804_s3 + $0x38] sm:$0xff]  ;;  %v1427_v17 = vld [vmem:[%s1804_s3 + $0x40] sm:$0xff]  ;;  %v1436_v18 = vld [vmem:[%s1804_s3 + $0x48] sm:$0xff]  ;;  %s959_s22 = sshll.u32 %s1320_s21, 4  ;;  %s960_s22 = int_to_ptr.vmem [resolvable:$true] %s959_s22 }
   0x8   :  { %v1441_v19 = vld [vmem:[%s1804_s3 + $0x50] sm:$0xff]  ;;  %v1450_v20 = vld [vmem:[%s1804_s3 + $0x58] sm:$0xff]  ;;  %v1455_v21 = vld [vmem:[%s1804_s3 + $0x60] sm:$0xff]  ;;  %p1295_p1 = scmp.lt.s32.totalorder %s960_s22, %s960_s22 }
   0x9   :  { %v1464_v22 = vld [vmem:[%s1804_s3 + $0x68] sm:$0xff]  ;;  %v1469_v23 = vld [vmem:[%s1804_s3 + $0x70] sm:$0xff]  ;;  %v1478_v24 = vld [vmem:[%s1804_s3 + $0x78] sm:$0xff] }
   0xa   :  { %658 = vrot.lane.b32.xlu0 %v989_v3, %s1315_s24  ;;  %v1494_v35 = vld [vmem:[%s1805_s4 + $0x8] sm:$0xff]  ;;  %v1499_v36 = vld [vmem:[%s1805_s4] sm:$0xff]  ;;  %v1516_v43 = vld [vmem:[%s1805_s4 + $0x18] sm:$0xff] }
   0xb   :  { %v1504_v37 = vld [vmem:[%s1806_s5 + $0x8] sm:$0xff]  ;;  %v1510_v40 = vld [vmem:[%s1806_s5] sm:$0xff]  ;;  %v1522_v45 = vld [vmem:[%s1805_s4 + $0x10] sm:$0xff] }
   0xc   :  { %v1528_v47 = vld [vmem:[%s1806_s5 + $0x18] sm:$0xff]  ;;  %v1534_v50 = vld [vmem:[%s1806_s5 + $0x10] sm:$0xff]  ;;  %v1540_v53 = vld [vmem:[%s1805_s4 + $0x28] sm:$0xff] }
   0xd   :  { %v1546_v56 = vld [vmem:[%s1805_s4 + $0x20] sm:$0xff]  ;;  %v1552_v58 = vld [vmem:[%s1806_s5 + $0x28] sm:$0xff] }
   0xe   :  { %661 = vrot.lane.b32.xlu0 %v989_v3, %s1316_s27  ;;  %v1558_v61 = vld [vmem:[%s1806_s5 + $0x20] sm:$0xff] }
  0x12   :  { %664 = vrot.lane.b32.xlu0 %v989_v3, %s1314_s23  ;;  %s1290_s23 = scalar_lea.vmem %s960_s22, 2048 }
  0x13   :  { %p1291_p0 = scmp.ne.s32.totalorder %s960_s22, %s1290_s23  ;;  %p1296_p2 = scmp.lt.s32.totalorder %s1290_s23, %s1290_s23 }
  0x15   :  { %p1297_p3 = por %p1296_p2, %p1295_p1 }
  0x17   :  { %p1298_p4 = pnand %p1297_p3, %p1291_p0 }
  0x2b   :  { %81 = vxpose.xlu1.b32.start.end [1/1] (short) (narrow) %v80_v0, 16 }
  0x30   :  { %544 = vxpose.xlu0.b32.start.end [1/1] (short) (narrow) %v989_v3, 16 }
  0x74   :  { %v197_v4 = vpop.permute.xlu0 %196  ;;  %v203_v7 = vpop.permute.xlu1 %202 }
  0x75   :  { %v206_v5 = vsel %vm205_vm1, %v80_v0, %v197_v4  ;;  %v1564_v0 = vld [vmem:[%s1805_s4 + $0x38] sm:$0xff]  ;;  %v1570_v4 = vld [vmem:[%s1805_s4 + $0x30] sm:$0xff] }
  0x78   :  { %v200_v6 = vpop.permute.xlu0 %199 }
  0x79   :  { %v208_v8 = vsel %vm207_vm2, %v206_v5, %v200_v6  ;;  %v1576_v6 = vld [vmem:[%s1806_s5 + $0x38] sm:$0xff] }
  0x7a   :  { %v210_v9 = vsel %vm209_vm3, %v208_v8, %v203_v7 }
  0x7b   :  { %1089 = vmatprep.subr.mxu1 %v210_v9 }
  0x7c   :  { %1090 = vmatpush3.msra.mxu1 %v210_v9  ;;  %v659_v27 = vpop.permute.xlu0 %658  ;;  %v1582_v9 = vld [vmem:[%s1806_s5 + $0x30] sm:$0xff] }
  0x7d   :  { %1092 = vmatmul.mubr.msk.f32.vlgmr.msra.gmra.mrb[0].mxu1 %vm113_vm0, %v1380_v10  ;;  %1150 = vmatprep.subr.mxu1 %v24_v2  ;;  %v667_v28 = vsel %vm205_vm1, %v989_v3, %v659_v27  ;;  %v1588_v27 = vld [vmem:[%s1805_s4 + $0x48] sm:$0xff] }
  0x7e   :  { %1094 = vmatprep.mubr.msk.f32.mxu1 %vm113_vm0, %v1385_v11  ;;  %1151 = vmatpush3.msra.mxu1 %v24_v2 }
  0x80   :  { %v662_v29 = vpop.permute.xlu0 %661 }
  0x81   :  { %1095 = vmatmul.mubr.msk.f32.gmra.mrb[2].mxu1 %vm113_vm0, %v1394_v12  ;;  %v668_v30 = vsel %vm207_vm2, %v667_v28, %v662_v29 }
  0x82   :  { %1097 = vmatprep.mubr.msk.f32.mxu1 %vm113_vm0, %v1399_v13 }
  0x84   :  { %v665_v31 = vpop.permute.xlu0 %664 }
  0x85   :  { %1098 = vmatmul.mubr.msk.f32.gmra.mrb[4].mxu1 %vm113_vm0, %v1408_v14  ;;  %v1487_v32 = vsel %vm209_vm3, %v668_v30, %v665_v31  ;;  %v1594_v30 = vld [vmem:[%s1805_s4 + $0x40] sm:$0xff] }
  0x86   :  { %1100 = vmatprep.mubr.msk.f32.mxu1 %vm113_vm0, %v1413_v15 }
  0x89   :  { %1101 = vmatmul.mubr.msk.f32.gmra.mrb[6].mxu1 %vm113_vm0, %v1422_v16 }
  0x8a   :  { %1103 = vmatprep.mubr.msk.f32.mxu1 %vm113_vm0, %v1427_v17 }
  0x8d   :  { %1104 = vmatmul.mubr.msk.f32.gmra.mrb[8].mxu1 %vm113_vm0, %v1436_v18 }
  0x8e   :  { %1106 = vmatprep.mubr.msk.f32.mxu1 %vm113_vm0, %v1441_v19 }
  0x91   :  { %1107 = vmatmul.mubr.msk.f32.gmra.mrb[10].mxu1 %vm113_vm0, %v1450_v20 }
  0x92   :  { %1109 = vmatprep.mubr.msk.f32.mxu1 %vm113_vm0, %v1455_v21 }
  0x95   :  { %1110 = vmatmul.mubr.msk.f32.gmra.mrb[12].mxu1 %vm113_vm0, %v1464_v22 }
  0x96   :  { %1112 = vmatprep.mubr.msk.f32.mxu1 %vm113_vm0, %v1469_v23 }
  0x99   :  { %1113 = vmatmul.mubr.msk.f32.gmra.mrb[14].mxu1 %vm113_vm0, %v1478_v24 }
  0xab   :  { %v97_v25 = vpop.trf.xlu1 }
  0xac   :  { %1086 = vmatprep.mubr.msk.f32.mxu0 %vm113_vm0, %v97_v25 }
  0xaf   :  { %v98_v26 = vpop.trf.xlu1 }
  0xb0   :  { %1087 = vmatmul.mubr.msk.f32.vlgmr.msra.gmra.mrb[0].mxu0 %vm113_vm0, %v98_v26  ;;  %v560_v33 = vpop.trf.xlu0 }
  0xb1   :  { %1152 = vmatprep.mubr.msk.f32.mxu1 %vm113_vm0, %v560_v33  ;;  %v1600_v33 = vld [vmem:[%s1806_s5 + $0x48] sm:$0xff] }
  0xb4   :  { %v561_v34 = vpop.trf.xlu0 }
  0xb5   :  { %1153 = vmatmul.mubr.msk.f32.vlgmr.msra.gmra.mrb[16].mxu1 %vm113_vm0, %v561_v34 }
 0x150   :  { %v1093_v38 = vpop.f32.mrb[0].mxu1 }
 0x151   :  { %v405_v39 = vmul.f32 %v1093_v38, %v1494_v35  ;;  %v325_v41 = vpop.f32.mrb[1].mxu1 }
 0x152   :  { %v404_v42 = vmul.f32 %v325_v41, %v1499_v36 }
 0x153   :  { %v421_v44 = vadd.f32 %v405_v39, %v1504_v37  ;;  %v1606_v39 = vld [vmem:[%s1806_s5 + $0x40] sm:$0xff] }
 0x154   :  { %v420_v46 = vadd.f32 %v404_v42, %v1510_v40  ;;  %v1096_v48 = vpop.f32.mrb[2].mxu1 }
 0x155   :  { %v407_v49 = vmul.f32 %v1096_v48, %v1516_v43  ;;  %v335_v51 = vpop.f32.mrb[3].mxu1 }
 0x156   :  { %v406_v52 = vmul.f32 %v335_v51, %v1522_v45  ;;  %v1216_v54 = vpack.c.bf16 %v421_v44, %v420_v46  ;;  %v1612_v44 = vld [vmem:[%s1805_s4 + $0x58] sm:$0xff] }
 0x157   :  { %v423_v55 = vadd.f32 %v407_v49, %v1528_v47  ;;  %v1618_v49 = vld [vmem:[%s1805_s4 + $0x50] sm:$0xff] }
 0x158   :  { %v422_v57 = vadd.f32 %v406_v52, %v1534_v50  ;;  %v1099_v59 = vpop.f32.mrb[4].mxu1  ;;  %1217 = vmatprep.subr.bf16.mxu0 %v1216_v54  ;;  %v1624_v52 = vld [vmem:[%s1806_s5 + $0x58] sm:$0xff] }
 0x159   :  { %v409_v60 = vmul.f32 %v1099_v59, %v1540_v53  ;;  %v345_v62 = vpop.f32.mrb[5].mxu1  ;;  %1219 = vmatpush3.bf16.msra.mxu0 %v1216_v54 }
 0x15a   :  { %v408_v63 = vmul.f32 %v345_v62, %v1546_v56  ;;  %v1220_v2 = vpack.c.bf16 %v423_v55, %v422_v57  ;;  %v1630_v57 = vld [vmem:[%s1806_s5 + $0x50] sm:$0xff]  ;;  %v1636_v62 = vld [vmem:[%s1805_s4 + $0x68] sm:$0xff] }
 0x15b   :  { %v425_v3 = vadd.f32 %v409_v60, %v1552_v58 }
 0x15c   :  { %v424_v5 = vadd.f32 %v408_v63, %v1558_v61  ;;  %v1102_v7 = vpop.f32.mrb[6].mxu1  ;;  %1221 = vmatprep.subr.bf16.mxu0 %v1220_v2 }
 0x15d   :  { %v411_v8 = vmul.f32 %v1102_v7, %v1564_v0  ;;  %v355_v25 = vpop.f32.mrb[7].mxu1  ;;  %1223 = vmatpush3.bf16.msra.mxu0 %v1220_v2  ;;  %v1648_v7 = vld [vmem:[%s1806_s5 + $0x68] sm:$0xff] }
 0x15e   :  { %v410_v26 = vmul.f32 %v355_v25, %v1570_v4  ;;  %v1224_v28 = vpack.c.bf16 %v425_v3, %v424_v5  ;;  %v1642_v3 = vld [vmem:[%s1805_s4 + $0x60] sm:$0xff] }
 0x15f   :  { %v427_v29 = vadd.f32 %v411_v8, %v1576_v6 }
 0x160   :  { %v426_v31 = vadd.f32 %v410_v26, %v1582_v9  ;;  %v1105_v34 = vpop.f32.mrb[8].mxu1  ;;  %1225 = vmatprep.subr.bf16.mxu0 %v1224_v28  ;;  %v1654_v26 = vld [vmem:[%s1806_s5 + $0x60] sm:$0xff] }
 0x161   :  { %v413_v38 = vmul.f32 %v1105_v34, %v1588_v27  ;;  %v365_v41 = vpop.f32.mrb[9].mxu1  ;;  %1227 = vmatpush3.bf16.msra.mxu0 %v1224_v28 }
 0x162   :  { %v412_v42 = vmul.f32 %v365_v41, %v1594_v30  ;;  %v1228_v46 = vpack.c.bf16 %v427_v29, %v426_v31  ;;  %v1660_v31 = vld [vmem:[%s1805_s4 + $0x78] sm:$0xff]  ;;  %v1666_v41 = vld [vmem:[%s1805_s4 + $0x70] sm:$0xff] }
 0x163   :  { %v429_v48 = vadd.f32 %v413_v38, %v1600_v33 }
 0x164   :  { %v428_v51 = vadd.f32 %v412_v42, %v1606_v39  ;;  %v1108_v54 = vpop.f32.mrb[10].mxu1  ;;  %1229 = vmatprep.subr.bf16.mxu0 %v1228_v46 }
 0x165   :  { %v415_v55 = vmul.f32 %v1108_v54, %v1612_v44  ;;  %v375_v59 = vpop.f32.mrb[11].mxu1  ;;  %1231 = vmatpush3.bf16.msra.mxu0 %v1228_v46  ;;  %v1672_v46 = vld [vmem:[%s1806_s5 + $0x78] sm:$0xff]  ;;  %v1678_v54 = vld [vmem:[%s1806_s5 + $0x70] sm:$0xff]  ;;  %s1318_s5 = smov 112  }
 0x166   :  { %v414_v60 = vmul.f32 %v375_v59, %v1618_v49  ;;  %v1232_v63 = vpack.c.bf16 %v429_v48, %v428_v51 }
 0x167   :  { %v431_v2 = vadd.f32 %v415_v55, %v1624_v52 }
 0x168   :  { %v430_v5 = vadd.f32 %v414_v60, %v1630_v57  ;;  %v1111_v8 = vpop.f32.mrb[12].mxu1  ;;  %1233 = vmatprep.subr.bf16.mxu0 %v1232_v63 }
 0x169   :  { %v417_v25 = vmul.f32 %v1111_v8, %v1636_v62  ;;  %v385_v28 = vpop.f32.mrb[13].mxu1  ;;  %1235 = vmatpush3.bf16.msra.mxu0 %v1232_v63  ;;  %v1687_v8 = vld [vmem:[%s1803_s2] ss:$0 sm:$0xff]  ;;  %s1317_s2 = smov 96  }
 0x16a   :  { %v416_v29 = vmul.f32 %v385_v28, %v1642_v3  ;;  %v1236_v34 = vpack.c.bf16 %v431_v2, %v430_v5 }
 0x16b   :  { %v433_v38 = vadd.f32 %v417_v25, %v1648_v7 }
 0x16c   :  { %v432_v42 = vadd.f32 %v416_v29, %v1654_v26  ;;  %v1114_v48 = vpop.f32.mrb[14].mxu1  ;;  %1237 = vmatprep.subr.bf16.mxu0 %v1236_v34 }
 0x16d   :  { %v419_v51 = vmul.f32 %v1114_v48, %v1660_v31  ;;  %v395_v55 = vpop.f32.mrb[15].mxu1  ;;  %1239 = vmatpush3.bf16.msra.mxu0 %v1236_v34 }
 0x16e   :  { %v418_v59 = vmul.f32 %v395_v55, %v1666_v41  ;;  %v1240_v60 = vpack.c.bf16 %v433_v38, %v432_v42 }
 0x16f   :  { %v435_v63 = vadd.f32 %v419_v51, %v1672_v46 }
 0x170   :  { %v434_v2 = vadd.f32 %v418_v59, %v1678_v54  ;;  %1241 = vmatprep.subr.bf16.mxu0 %v1240_v60 }
 0x171   :  { %1243 = vmatpush3.bf16.msra.mxu0 %v1240_v60 }
 0x172   :  { %v1244_v5 = vpack.c.bf16 %v435_v63, %v434_v2 }
 0x174   :  { %1245 = vmatprep.subr.bf16.mxu0 %v1244_v5 }
 0x175   :  { %1247 = vmatpush3.bf16.msra.mxu0 %v1244_v5 }
 0x176   :  { %1155 = vmatprep.subr.mxu0 %v1487_v32 }
 0x183   :  { %v1088_v25 = vpop.f32.mrb[0].mxu0 }
 0x184   :  { %v186_v28 = vpop.f32.mrb[1].mxu0  ;;  %v192_v34 = vadd.f32 %v1088_v25, %v1687_v8 }
 0x185   :  { %v187_v29 = vadd.f32 %v1687_v8, %v186_v28 }
 0x187   :  { %1147 = vmatprep.mubr.f32.mxu0 %v187_v29 }
 0x188   :  { %1148 = vmatmul.mubr.f32.vlgmr.msra.gmra.mrb[2].mxu0 %v192_v34 }
 0x189   :  { %1156 = vmatpush3.msra.mxu0 %v1487_v32  ;;  %1157 = vmatprep.mubr.msk.f32.mxu0 %vm113_vm0, %v1364_v1  ;;  %v1724_v1 = vpop.f32.mrb[16].mxu1 }
 0x18c   :  { %1158 = vmatmul.mubr.msk.f32.vlgmr.msra.gmra.mrb[4].mxu0 %vm113_vm0, %v1380_v10  ;;  %v648_v10 = vpop.f32.mrb[17].mxu1 }
 0x18d   :  { %1160 = vmatprep.mubr.msk.f32.mxu0 %vm113_vm0, %v1385_v11  ;;  %v649_v11 = vadd.f32 %v1687_v8, %v648_v10 }
 0x18f   :  { %1213 = vmatprep.mubr.f32.mxu1 %v649_v11 }
 0x190   :  { %1161 = vmatmul.mubr.msk.f32.gmra.mrb[6].mxu0 %vm113_vm0, %v1394_v12 }
 0x191   :  { %1163 = vmatprep.mubr.msk.f32.mxu0 %vm113_vm0, %v1399_v13 }
 0x194   :  { %1164 = vmatmul.mubr.msk.f32.gmra.mrb[8].mxu0 %vm113_vm0, %v1408_v14 }
 0x195   :  { %1166 = vmatprep.mubr.msk.f32.mxu0 %vm113_vm0, %v1413_v15 }
 0x198   :  { %1167 = vmatmul.mubr.msk.f32.gmra.mrb[10].mxu0 %vm113_vm0, %v1422_v16 }
 0x199   :  { %1169 = vmatprep.mubr.msk.f32.mxu0 %vm113_vm0, %v1427_v17 }
 0x19c   :  { %1170 = vmatmul.mubr.msk.f32.gmra.mrb[12].mxu0 %vm113_vm0, %v1436_v18 }
 0x19d   :  { %1172 = vmatprep.mubr.msk.f32.mxu0 %vm113_vm0, %v1441_v19 }
 0x1a0   :  { %1173 = vmatmul.mubr.msk.f32.gmra.mrb[14].mxu0 %vm113_vm0, %v1450_v20 }
 0x1a1   :  { %1175 = vmatprep.mubr.msk.f32.mxu0 %vm113_vm0, %v1455_v21 }
 0x1a4   :  { %1176 = vmatmul.mubr.msk.f32.gmra.mrb[16].mxu0 %vm113_vm0, %v1464_v22 }
 0x1a5   :  { %1178 = vmatprep.mubr.msk.f32.mxu0 %vm113_vm0, %v1469_v23 }
 0x1a8   :  { %1179 = vmatmul.mubr.msk.f32.gmra.mrb[18].mxu0 %vm113_vm0, %v1478_v24 }
 0x25b   :  { %v1149_v12 = vpop.f32.mrb[2].mxu0 }
 0x25c   :  { %512 = vst.msk [vmem:[#allocation2 + $0x8] sm:$0xff] %vm205_vm1, %v1149_v12  ;;  %526 = vrot.lane.b32.xlu1 %v1149_v12, %s1317_s2  ;;  %517 = vrot.lane.b32.xlu0 %v1149_v12, %s1318_s5  ;;  %v502_v13 = vpop.f32.mrb[3].mxu0 }
 0x25d   :  { %511 = vst.msk [vmem:[#allocation2] sm:$0xff] %vm205_vm1, %v502_v13 }
 0x25f   :  { %v1159_v14 = vpop.f32.mrb[4].mxu0 }
 0x260   :  { %v816_v15 = vmul.f32 %v1159_v14, %v1494_v35  ;;  %535 = vrot.lane.b32.xlu1 %v1149_v12, %s1319_s20  ;;  %v736_v16 = vpop.f32.mrb[5].mxu0 }
 0x261   :  { %v815_v17 = vmul.f32 %v736_v16, %v1499_v36 }
 0x262   :  { %v832_v18 = vadd.f32 %v816_v15, %v1504_v37 }
 0x263   :  { %v831_v19 = vadd.f32 %v815_v17, %v1510_v40  ;;  %v1162_v20 = vpop.f32.mrb[6].mxu0 }
 0x264   :  { %v818_v21 = vmul.f32 %v1162_v20, %v1516_v43  ;;  %515 = vrot.lane.b32.xlu1 %v502_v13, %s1318_s5  ;;  %v746_v22 = vpop.f32.mrb[7].mxu0 }
 0x265   :  { %v817_v23 = vmul.f32 %v746_v22, %v1522_v45  ;;  %v1248_v24 = vpack.c.bf16 %v832_v18, %v831_v19 }
 0x266   :  { %v834_v32 = vadd.f32 %v818_v21, %v1528_v47 }
 0x267   :  { %v833_v35 = vadd.f32 %v817_v23, %v1534_v50  ;;  %v1165_v38 = vpop.f32.mrb[8].mxu0  ;;  %1249 = vmatprep.subr.bf16.mxu1 %v1248_v24 }
 0x268   :  { %v820_v36 = vmul.f32 %v1165_v38, %v1540_v53  ;;  %524 = vrot.lane.b32.xlu1 %v502_v13, %s1317_s2  ;;  %v756_v37 = vpop.f32.mrb[9].mxu0  ;;  %1251 = vmatpush3.bf16.msra.mxu1 %v1248_v24 }
 0x269   :  { %v819_v40 = vmul.f32 %v756_v37, %v1546_v56  ;;  %v1252_v43 = vpack.c.bf16 %v834_v32, %v833_v35 }
 0x26a   :  { %v836_v42 = vadd.f32 %v820_v36, %v1552_v58 }
 0x26b   :  { %v835_v45 = vadd.f32 %v819_v40, %v1558_v61  ;;  %v1168_v48 = vpop.f32.mrb[10].mxu0  ;;  %1253 = vmatprep.subr.bf16.mxu1 %v1252_v43 }
 0x26c   :  { %v822_v47 = vmul.f32 %v1168_v48, %v1564_v0  ;;  %533 = vrot.lane.b32.xlu1 %v502_v13, %s1319_s20  ;;  %v766_v50 = vpop.f32.mrb[11].mxu0  ;;  %1255 = vmatpush3.bf16.msra.mxu1 %v1252_v43 }
 0x26d   :  { %v821_v53 = vmul.f32 %v766_v50, %v1570_v4  ;;  %v1256_v51 = vpack.c.bf16 %v836_v42, %v835_v45 }
 0x26e   :  { %v838_v55 = vadd.f32 %v822_v47, %v1576_v6 }
 0x26f   :  { %v837_v56 = vadd.f32 %v821_v53, %v1582_v9  ;;  %v1171_v59 = vpop.f32.mrb[12].mxu0  ;;  %1257 = vmatprep.subr.bf16.mxu1 %v1256_v51 }
 0x270   :  { %v824_v58 = vmul.f32 %v1171_v59, %v1588_v27  ;;  %v776_v61 = vpop.f32.mrb[13].mxu0  ;;  %1259 = vmatpush3.bf16.msra.mxu1 %v1256_v51 }
 0x271   :  { %v823_v60 = vmul.f32 %v776_v61, %v1594_v30  ;;  %v1260_v0 = vpack.c.bf16 %v838_v55, %v837_v56 }
 0x272   :  { %v840_v63 = vadd.f32 %v824_v58, %v1600_v33 }
 0x273   :  { %v839_v2 = vadd.f32 %v823_v60, %v1606_v39  ;;  %v1174_v5 = vpop.f32.mrb[14].mxu0  ;;  %1261 = vmatprep.subr.bf16.mxu1 %v1260_v0 }
 0x274   :  { %v826_v4 = vmul.f32 %v1174_v5, %v1612_v44  ;;  %v786_v6 = vpop.f32.mrb[15].mxu0  ;;  %1263 = vmatpush3.bf16.msra.mxu1 %v1260_v0 }
 0x275   :  { %v825_v9 = vmul.f32 %v786_v6, %v1618_v49  ;;  %v1264_v25 = vpack.c.bf16 %v840_v63, %v839_v2 }
 0x276   :  { %v842_v27 = vadd.f32 %v826_v4, %v1624_v52 }
 0x277   :  { %v841_v28 = vadd.f32 %v825_v9, %v1630_v57  ;;  %v1177_v29 = vpop.f32.mrb[16].mxu0  ;;  %1265 = vmatprep.subr.bf16.mxu1 %v1264_v25 }
 0x278   :  { %v828_v30 = vmul.f32 %v1177_v29, %v1636_v62  ;;  %v796_v33 = vpop.f32.mrb[17].mxu0  ;;  %1267 = vmatpush3.bf16.msra.mxu1 %v1264_v25 }
 0x279   :  { %v827_v39 = vmul.f32 %v796_v33, %v1642_v3  ;;  %v1268_v34 = vpack.c.bf16 %v842_v27, %v841_v28 }
 0x27a   :  { %v844_v44 = vadd.f32 %v828_v30, %v1648_v7  ;;  %v654_v7 = vadd.f32 %v1724_v1, %v1687_v8 }
 0x27b   :  { %v843_v10 = vadd.f32 %v827_v39, %v1654_v26  ;;  %v1180_v11 = vpop.f32.mrb[18].mxu0  ;;  %1269 = vmatprep.subr.bf16.mxu1 %v1268_v34 }
 0x27c   :  { %v830_v49 = vmul.f32 %v1180_v11, %v1660_v31  ;;  %v806_v52 = vpop.f32.mrb[19].mxu0  ;;  %1271 = vmatpush3.bf16.msra.mxu1 %v1268_v34 }
 0x27d   :  { %v829_v57 = vmul.f32 %v806_v52, %v1666_v41  ;;  %v1272_v12 = vpack.c.bf16 %v844_v44, %v843_v10 }
 0x27e   :  { %v846_v62 = vadd.f32 %v830_v49, %v1672_v46 }
 0x27f   :  { %v845_v13 = vadd.f32 %v829_v57, %v1678_v54  ;;  %1273 = vmatprep.subr.bf16.mxu1 %v1272_v12 }
 0x280   :  { %1275 = vmatpush3.bf16.msra.mxu1 %v1272_v12 }
 0x281   :  { %v1276_v3 = vpack.c.bf16 %v846_v62, %v845_v13 }
 0x283   :  { %1277 = vmatprep.subr.bf16.mxu1 %v1276_v3 }
 0x284   :  { %1279 = vmatpush3.bf16.msra.mxu1 %v1276_v3 }
 0x287   :  { %1214 = vmatmul.mubr.f32.vlgmr.msra.gmra.mrb[18].mxu1 %v654_v7 }
 0x2ce   :  { %v527_v26 = vpop.permute.xlu1 %526  ;;  %v518_v31 = vpop.permute.xlu0 %517 }
 0x2cf   :  { %532 = vst.msk [vmem:[#allocation2 + $0x28] sm:$0xff] %vm205_vm1, %v527_v26  ;;  %523 = vst.msk [vmem:[#allocation2 + $0x18] sm:$0xff] %vm205_vm1, %v518_v31 }
 0x2d2   :  { %v536_v41 = vpop.permute.xlu1 %535 }
 0x2d3   :  { %541 = vst.msk [vmem:[#allocation2 + $0x38] sm:$0xff] %vm205_vm1, %v536_v41 }
 0x2d6   :  { %v516_v46 = vpop.permute.xlu1 %515 }
 0x2d7   :  { %522 = vst.msk [vmem:[#allocation2 + $0x10] sm:$0xff] %vm205_vm1, %v516_v46 }
 0x2da   :  { %v525_v54 = vpop.permute.xlu1 %524 }
 0x2db   :  { %531 = vst.msk [vmem:[#allocation2 + $0x20] sm:$0xff] %vm205_vm1, %v525_v54 }
 0x2de   :  { %v534_v14 = vpop.permute.xlu1 %533 }
 0x2df   :  { %540 = vst.msk [vmem:[#allocation2 + $0x30] sm:$0xff] %vm205_vm1, %v534_v14 }
 0x35a   :  { %v1215_v8 = vpop.f32.mrb[18].mxu1 }
 0x35b   :  { %924 = vst.msk [vmem:[#allocation2 + $0x48] sm:$0xff] %vm205_vm1, %v1215_v8  ;;  %929 = vrot.lane.b32.xlu1 %v1215_v8, %s1318_s5  ;;  %v913_v1 = vpop.f32.mrb[19].mxu1 }
 0x35c   :  { %923 = vst.msk [vmem:[#allocation2 + $0x40] sm:$0xff] %vm205_vm1, %v913_v1  ;;  %927 = vrot.lane.b32.xlu0 %v913_v1, %s1318_s5 }
 0x35f   :  { %938 = vrot.lane.b32.xlu1 %v1215_v8, %s1317_s2 }
 0x360   :  { %936 = vrot.lane.b32.xlu0 %v913_v1, %s1317_s2 }
 0x363   :  { %947 = vrot.lane.b32.xlu1 %v1215_v8, %s1319_s20 }
 0x364   :  { %945 = vrot.lane.b32.xlu0 %v913_v1, %s1319_s20 }
 0x3cd   :  { %v930_v15 = vpop.permute.xlu1 %929 }
 0x3ce   :  { %935 = vst.msk [vmem:[#allocation2 + $0x58] sm:$0xff] %vm205_vm1, %v930_v15  ;;  %v928_v16 = vpop.permute.xlu0 %927 }
 0x3cf   :  { %934 = vst.msk [vmem:[#allocation2 + $0x50] sm:$0xff] %vm205_vm1, %v928_v16 }
 0x3d1   :  { %v939_v17 = vpop.permute.xlu1 %938 }
 0x3d2   :  { %944 = vst.msk [vmem:[#allocation2 + $0x68] sm:$0xff] %vm205_vm1, %v939_v17  ;;  %v937_v18 = vpop.permute.xlu0 %936 }
 0x3d3   :  { %943 = vst.msk [vmem:[#allocation2 + $0x60] sm:$0xff] %vm205_vm1, %v937_v18 }
 0x3d5   :  { %v948_v19 = vpop.permute.xlu1 %947 }
 0x3d6   :  { %953 = vst.msk [vmem:[#allocation2 + $0x78] sm:$0xff] %vm205_vm1, %v948_v19  ;;  %v946_v20 = vpop.permute.xlu0 %945 }
 0x3d7   :  { %952 = vst.msk [vmem:[#allocation2 + $0x70] sm:$0xff] %vm205_vm1, %v946_v20 }
 0x3d8   :  { %1301 = shalt.err (!%p1298_p4)
}
 0x3d9   :  { %s1302_s26 = scalar_lea.hbm %s1807_s6, 2048 }
 0x3da   :  { %p1303_p5 = scmp.ne.s32.totalorder %s1807_s6, %s1302_s26  ;;  %p1306_p6 = scmp.lt.u32.totalorder %s1302_s26, %s1807_s6 }
 0x3dc   :  { %p1308_p7 = pnand %p1306_p6, %p1303_p5 }
 0x3de   :  { %1311 = shalt.err (!%p1308_p7)
}
 0x3df   :  { %s1321_s7 = smov 128   ;;  %s1322_s1 = smov 8  }
 0x3e0   :  { %965 = dma.vmem_to_hbm [thread:$0]  %s960_s22, 2048, %s1807_s6, [#allocation3], %s1321_s7, %s1321_s7, %s1322_s1  }
 0x3e1   :  { %1312 = dma.done.wait [#allocation3], 2048  }
 0x3e2   :  { %1313 = vsyncadd [#allocation3], 4294965248 }
 0x3e3   :  { %969 = vsyncpa [#allocation3], 1 }

</bundles_post_ra>
